<compile_context>
chip_gen: v6e
topology: v6e:2x2x1
jax: 0.10.0
libtpu: 0.0.40
codegen_flags: <defaults>
</compile_context>

<pallas_src>
import functools

import jax
import jax.numpy as jnp
import numpy as np
from jax.experimental import pallas as pl
from jax.experimental.pallas import tpu as pltpu

_MIB = 1 << 20


def _softplus(z):
    # Matches torch.nn.Softplus(beta=1, threshold=20) within f32 precision:
    # for z > 20 the log1p term underflows relative to z, giving z exactly.
    return jnp.maximum(z, 0.0) + jnp.log1p(jnp.exp(-jnp.abs(z)))


# ---------------------------------------------------------------------------
# Kernels
# ---------------------------------------------------------------------------
def _nb_head_kernel(x_ref, w_ref, b_ref, out_ref):
    """Whole-K path: fused matmul + bias + softplus, lane-dense store."""
    z = jnp.dot(x_ref[...], w_ref[...], preferred_element_type=jnp.float32)
    z = z + b_ref[...]
    out_ref[...] = (_softplus(z) + 1e-6).astype(out_ref.dtype)


def _nb_head_ktiled_kernel(x_ref, w_ref, b_ref, out_ref, acc_ref):
    """K-tiled path (large input_dim): f32 accumulator across k-steps."""
    k = pl.program_id(1)

    @pl.when(k == 0)
    def _():
        acc_ref[...] = jnp.zeros_like(acc_ref)

    acc_ref[...] += jnp.dot(x_ref[...], w_ref[...],
                            preferred_element_type=jnp.float32)

    @pl.when(k == pl.num_programs(1) - 1)
    def _():
        z = acc_ref[...] + b_ref[...]
        out_ref[...] = (_softplus(z) + 1e-6).astype(out_ref.dtype)


# ---------------------------------------------------------------------------
# Tiling / VMEM sizing (all static, runs at trace time)
# ---------------------------------------------------------------------------
def _vmem_capacity_bytes():
    try:
        info = pltpu.get_tpu_info()
        return int(getattr(info, "vmem_capacity_bytes", 64 * _MIB))
    except Exception:
        return 64 * _MIB  # conservative fallback (v7x per-TC size)


def _vmem_budget():
    """(tiling budget, vmem_limit_bytes), derived from the chip's VMEM size."""
    cap = _vmem_capacity_bytes()
    # Leave Mosaic internal-scratch headroom: never request the whole VMEM.
    vmem_limit = min(cap * 3 // 4, 100 * _MIB)   # ~48 MiB on v7x, ~96 MiB on v5e/v6e
    budget = min(cap // 2, 96 * _MIB)            # ~32 MiB on v7x, ~64 MiB on v5e/v6e
    return budget, vmem_limit


def _vmem_need_bytes(tile_m, tile_k, n2, x_bytes, out_bytes, k_tiled):
    # Every input/output BlockSpec is double-buffered by the Pallas pipeline,
    # INCLUDING the resident weight/bias whose block index never changes.
    weights = 2 * (tile_k * n2 * x_bytes + n2 * 4)
    xin = 2 * tile_m * tile_k * x_bytes
    out = 2 * tile_m * n2 * out_bytes
    acc = tile_m * n2 * 4 if k_tiled else 0
    return weights + xin + out + acc


def _choose_tile_k(k, n2, x_bytes, budget):
    """Keep whole K resident unless the (double-buffered) weight > budget/4."""
    if 2 * k * n2 * x_bytes <= budget // 4:
        return k
    for cand in (2048, 1024, 512, 256, 128):
        if cand < k and k % cand == 0 and 2 * cand * n2 * x_bytes <= budget // 4:
            return cand
    return k  # no clean multiple-of-128 divisor: keep whole K (rows shrink instead)


def _choose_tile_m(m, tile_k, n2, x_bytes, out_bytes, k_tiled, budget, min_tile):
    """Largest row tile (multiple of min_tile) whose pipeline fits `budget`."""
    m_up = ((max(m, 1) + min_tile - 1) // min_tile) * min_tile
    for cand in (8192, 4096, 2048, 1024, 512, 256, 128, 64, 32, 16, 8):
        if cand < min_tile or cand > m_up:
            continue
        if _vmem_need_bytes(cand, tile_k, n2, x_bytes, out_bytes, k_tiled) <= budget:
            return cand
    return min_tile


# ---------------------------------------------------------------------------
# Wrapper
# ---------------------------------------------------------------------------
@functools.partial(jax.jit, static_argnames=("tile_m", "tile_k", "out_dtype"))
def negative_binomial_head(x, w_rate, b_rate, w_disp, b_disp, *,
                           tile_m=None, tile_k=None, out_dtype=jnp.float32):
    """NegativeBinomialHead.forward: (..., K) -> (..., N, 2).

    out[..., j, 0] = softplus(x @ w_rate[:, j] + b_rate[j]) + 1e-6     (rate)
    out[..., j, 1] = softplus(x @ w_disp[:, j] + b_disp[j]) + 1e-6     (dispersion)

    Weights are stored [input_dim, output_dim] (transposed vs torch's [out, in]).
    x is consumed in its own dtype (f32 or bf16): pass bf16 activations from the
    producer to halve read traffic; there is no wrapper-side cast pass over x.
    """
    lead = x.shape[:-1]
    k = x.shape[-1]
    n = w_rate.shape[1]
    n2 = 2 * n
    m = int(np.prod(lead)) if lead else 1

    in_dtype = jnp.bfloat16 if x.dtype == jnp.bfloat16 else jnp.float32
    x_bytes = 2 if in_dtype == jnp.bfloat16 else 4
    out_bytes = jnp.zeros((), out_dtype).dtype.itemsize
    # bf16 packs 16 rows per sublane group; avoid half-filled vregs / masked
    # sublane loads by requiring tile_m % 16 on the bf16 path.
    min_tile = 16 if in_dtype == jnp.bfloat16 else 8

    budget, vmem_limit = _vmem_budget()
    if tile_k is None:
        tile_k = _choose_tile_k(k, n2, x_bytes, budget)
    k_tiled = tile_k != k
    if tile_m is None:
        tile_m = _choose_tile_m(m, tile_k, n2, x_bytes, out_bytes, k_tiled,
                                budget, min_tile)
    assert tile_m % min_tile == 0, "tile_m must be a multiple of %d" % min_tile
    if k_tiled:
        assert k % tile_k == 0 and tile_k % 128 == 0

    x2d = x.reshape(m, k).astype(in_dtype)   # free view (dtype already matches)

    # Interleave rate/dispersion columns: one matmul yields [r0, d0, r1, d1, ...]
    # so the final (..., N, 2) stack is a free row-major reshape of (M, 2N).
    # (K*N-sized prep — negligible vs the M*K activation traffic; in a real model
    #  pre-interleave once at parameter load time.)
    w_comb = jnp.stack([w_rate.astype(in_dtype), w_disp.astype(in_dtype)],
                       axis=-1).reshape(k, n2)
    b_comb = jnp.stack([b_rate.astype(jnp.float32), b_disp.astype(jnp.float32)],
                       axis=-1).reshape(1, n2)
    # NOTE: when 2N < 128 the output stores are masked (vst.msk).  We do NOT pad
    # the fused weight to a 128-lane multiple because the de-pad slice downstream
    # would cost an extra HBM pass; with small N the output traffic is minor.

    cost = pl.CostEstimate(
        flops=2 * m * k * n2,
        transcendentals=2 * m * n2,
        bytes_accessed=m * k * x_bytes + k * n2 * x_bytes + 4 * n2
                       + m * n2 * out_bytes,
    )

    m_tiles = pl.cdiv(m, tile_m)   # ragged last tile handled in-kernel

    if not k_tiled:
        grid_spec = pltpu.PrefetchScalarGridSpec(
            num_scalar_prefetch=0,
            grid=(m_tiles,),
            in_specs=[
                pl.BlockSpec((tile_m, k), lambda i: (i, 0)),   # x row tile
                pl.BlockSpec((k, n2), lambda i: (0, 0)),       # fused weights (resident)
                pl.BlockSpec((1, n2), lambda i: (0, 0)),       # fused bias (resident)
            ],
            out_specs=pl.BlockSpec((tile_m, n2), lambda i: (i, 0)),
        )
        kernel = _nb_head_kernel
        # "parallel" lets the 1-D row grid shard across v7x's two TensorCores.
        dim_sem = ("parallel",)
    else:
        grid_spec = pltpu.PrefetchScalarGridSpec(
            num_scalar_prefetch=0,
            grid=(m_tiles, k // tile_k),
            in_specs=[
                pl.BlockSpec((tile_m, tile_k), lambda i, j: (i, j)),
                pl.BlockSpec((tile_k, n2), lambda i, j: (j, 0)),
                pl.BlockSpec((1, n2), lambda i, j: (0, 0)),
            ],
            out_specs=pl.BlockSpec((tile_m, n2), lambda i, j: (i, 0)),
            scratch_shapes=[pltpu.VMEM((tile_m, n2), jnp.float32)],
        )
        kernel = _nb_head_ktiled_kernel
        dim_sem = ("parallel", "arbitrary")   # reduction axis last

    out2d = pl.pallas_call(
        kernel,
        out_shape=jax.ShapeDtypeStruct((m, n2), out_dtype),
        grid_spec=grid_spec,
        compiler_params=pltpu.CompilerParams(
            dimension_semantics=dim_sem,
            vmem_limit_bytes=int(vmem_limit),
        ),
        cost_estimate=cost,
    )(x2d, w_comb, b_comb)

    return out2d.reshape(*lead, n, 2)


# ---------------------------------------------------------------------------
# Reference + demo
# ---------------------------------------------------------------------------
def _init_linear_params(key, in_dim, out_dim):
    """Deterministic init mimicking torch.nn.Linear (uniform +/- 1/sqrt(in))."""
    k_w, k_b = jax.random.split(key)
    bound = 1.0 / np.sqrt(in_dim)
    # stored as [in_dim, out_dim] (transposed relative to torch's [out, in])
    w = jax.random.uniform(k_w, (in_dim, out_dim), jnp.float32, -bound, bound)
    b = jax.random.uniform(k_b, (out_dim,), jnp.float32, -bound, bound)
    return w, b


def _reference(x, w_rate, b_rate, w_disp, b_disp):
    x = x.astype(jnp.float32)
    rate = jax.nn.softplus(x @ w_rate + b_rate) + 1e-6
    disp = jax.nn.softplus(x @ w_disp + b_disp) + 1e-6
    return jnp.stack([rate, disp], axis=-1)


if __name__ == "__main__":
    key = jax.random.PRNGKey(0)

    # ---- Test 1: small f32 shapes (batch=2, seq=8, input_dim=32, output_dim=16)
    batch, seq, input_dim, output_dim = 2, 8, 32, 16
    k_x, k_rate, k_disp, k2 = jax.random.split(key, 4)
    x = jax.random.normal(k_x, (batch, seq, input_dim), jnp.float32)
    w_rate, b_rate = _init_linear_params(k_rate, input_dim, output_dim)
    w_disp, b_disp = _init_linear_params(k_disp, input_dim, output_dim)

    ref = _reference(x, w_rate, b_rate, w_disp, b_disp)
    out = jax.block_until_ready(
        negative_binomial_head(x, w_rate, b_rate, w_disp, b_disp))
    assert out.shape == (batch, seq, output_dim, 2), out.shape
    np.testing.assert_allclose(np.asarray(out), np.asarray(ref),
                               rtol=1e-5, atol=1e-5)

    # ---- Test 2: bf16 activations supplied by the producer (no wrapper cast)
    x_bf16 = x.astype(jnp.bfloat16)
    out_bf16 = jax.block_until_ready(
        negative_binomial_head(x_bf16, w_rate, b_rate, w_disp, b_disp))
    np.testing.assert_allclose(np.asarray(out_bf16), np.asarray(ref),
                               rtol=2e-2, atol=2e-2)

    # ---- Test 3: force the K-tiled path + a ragged row tile (M % tile_m != 0)
    m3, k3, n3 = 40, 256, 8
    k_x3, k_r3, k_d3 = jax.random.split(k2, 3)
    x3 = jax.random.normal(k_x3, (m3, k3), jnp.float32)
    w_r3, b_r3 = _init_linear_params(k_r3, k3, n3)
    w_d3, b_d3 = _init_linear_params(k_d3, k3, n3)
    ref3 = _reference(x3, w_r3, b_r3, w_d3, b_d3)
    out3 = jax.block_until_ready(
        negative_binomial_head(x3, w_r3, b_r3, w_d3, b_d3,
                               tile_m=32, tile_k=128))
    assert out3.shape == (m3, n3, 2), out3.shape
    np.testing.assert_allclose(np.asarray(out3), np.asarray(ref3),
                               rtol=1e-5, atol=1e-5)

    print("KERNEL_OK")
</pallas_src>

<mosaic_0001>
module attributes {stable_mosaic.version = 11 : i64} {
  func.func @_nb_head_kernel(%arg0: i32, %arg1: memref<16x32xf32, #tpu.memory_space<vmem>>, %arg2: memref<32x32xf32, #tpu.memory_space<vmem>>, %arg3: memref<1x32xf32, #tpu.memory_space<vmem>>, %arg4: memref<16x32xf32, #tpu.memory_space<vmem>>) attributes {dimension_semantics = [#tpu.dimension_semantics<parallel>], iteration_bounds = array<i64: 1>, scalar_prefetch = 0 : i64, scratch_operands = 0 : i64, tpu.core_type = #tpu.core_type<tc>, window_params = [{transform_indices = @transform_0, window_bounds = array<i64: 16, 32>}, {pipeline_mode = #tpu.pipeline_mode<synchronous>, transform_indices = @transform_1, window_bounds = array<i64: 32, 32>}, {pipeline_mode = #tpu.pipeline_mode<synchronous>, transform_indices = @transform_2, window_bounds = array<i64: 1, 32>}, {transform_indices = @transform_3, window_bounds = array<i64: 16, 32>}]} {
    %c0 = arith.constant 0 : index
    %c0_0 = arith.constant 0 : index
    %0 = vector.load %arg1[%c0, %c0_0] : memref<16x32xf32, #tpu.memory_space<vmem>>, vector<16x32xf32>
    %c0_1 = arith.constant 0 : index
    %c0_2 = arith.constant 0 : index
    %1 = vector.load %arg2[%c0_1, %c0_2] : memref<32x32xf32, #tpu.memory_space<vmem>>, vector<32x32xf32>
    %cst = arith.constant dense<0.000000e+00> : vector<16x32xf32>
    %2 = tpu.matmul %0, %1, %cst {dimension_numbers = #tpu.dot_dimension_numbers<[1], [0], [0], [1], [0, 0, 1, 1], [], []>} : vector<16x32xf32>, vector<32x32xf32>, vector<16x32xf32> -> vector<16x32xf32>
    %c0_3 = arith.constant 0 : index
    %c0_4 = arith.constant 0 : index
    %3 = vector.load %arg3[%c0_3, %c0_4] : memref<1x32xf32, #tpu.memory_space<vmem>>, vector<1x32xf32>
    %4 = vector.broadcast %3 : vector<1x32xf32> to vector<16x32xf32>
    %5 = arith.addf %2, %4 : vector<16x32xf32>
    %cst_5 = arith.constant 0.000000e+00 : f32
    %6 = vector.broadcast %cst_5 : f32 to vector<16x32xf32>
    %7 = arith.maximumf %5, %6 : vector<16x32xf32>
    %8 = math.absf %5 : vector<16x32xf32>
    %cst_6 = arith.constant 0.000000e+00 : f32
    %9 = vector.broadcast %cst_6 : f32 to vector<16x32xf32>
    %10 = arith.subf %9, %8 : vector<16x32xf32>
    %11 = math.exp %10 : vector<16x32xf32>
    %12 = math.log1p %11 : vector<16x32xf32>
    %13 = arith.addf %7, %12 : vector<16x32xf32>
    %cst_7 = arith.constant 9.99999997E-7 : f32
    %14 = vector.broadcast %cst_7 : f32 to vector<16x32xf32>
    %15 = arith.addf %13, %14 : vector<16x32xf32>
    %c0_8 = arith.constant 0 : index
    %c0_9 = arith.constant 0 : index
    %16 = vector.load %arg4[%c0_8, %c0_9] : memref<16x32xf32, #tpu.memory_space<vmem>>, vector<16x32xf32>
    tpu.vector_store %arg4[%c0_8, %c0_9], %15 {strides = array<i32>} : memref<16x32xf32, #tpu.memory_space<vmem>>, vector<16x32xf32>,
    return
  }
  func.func @transform_0(%arg0: i32) -> (i32, i32) {
    %c0_i32 = arith.constant 0 : i32
    %c0_i32_0 = arith.constant 0 : i32
    return %arg0, %c0_i32 : i32, i32
  }
  func.func @transform_1(%arg0: i32) -> (i32, i32) {
    %c0_i32 = arith.constant 0 : i32
    %c0_i32_0 = arith.constant 0 : i32
    %c0_i32_1 = arith.constant 0 : i32
    return %c0_i32, %c0_i32_0 : i32, i32
  }
  func.func @transform_2(%arg0: i32) -> (i32, i32) {
    %c0_i32 = arith.constant 0 : i32
    %c0_i32_0 = arith.constant 0 : i32
    %c0_i32_1 = arith.constant 0 : i32
    return %c0_i32, %c0_i32_0 : i32, i32
  }
  func.func @transform_3(%arg0: i32) -> (i32, i32) {
    %c0_i32 = arith.constant 0 : i32
    %c0_i32_0 = arith.constant 0 : i32
    return %arg0, %c0_i32 : i32, i32
  }
}

</mosaic_0001>

<bundles_post_ra>
// kernel: negative_binomial_head.1
= control target key start
LH: loop header
LB: loop body
LE: loop exit
PB: predicated region body
PF: predicated region fallthrough
CT: control target
= control target key end

     0   :  { %vm27_vm0 = vcmask 261120   ;;  %s226_s1 = inlined_call_operand.vmem [shape: f32[32,32], index: 1, kind: input, shape index: {}]   ;;  %s227_s0 = inlined_call_operand.vmem [shape: f32[16,32], index: 0, kind: input, shape index: {}]   ;;  %s228_s2 = inlined_call_operand.vmem [shape: f32[1,32], index: 2, kind: input, shape index: {}]   ;;  %s229_s3 = inlined_call_operand.vmem [shape: f32[16,32], index: 3, kind: output, shape index: {}]  }
   0x1   :  { %v19_v0 = vld [vmem:[%s226_s1 + $0x18] sm:$0xff]  ;;  %v18_v1 = vld [vmem:[%s226_s1 + $0x10] sm:$0xff]  ;;  %v14_v2 = vld [vmem:[%s227_s0] sm:$0xff] }
   0x2   :  { %156 = vmatprep.subr.mxu0 %v19_v0  ;;  %v17_v3 = vld [vmem:[%s226_s1 + $0x8] sm:$0xff]  ;;  %164 = vmatprep.mubr.msk.f32.mxu0 %vm27_vm0, %v14_v2  ;;  %v16_v4 = vld [vmem:[%s226_s1] sm:$0xff] }
   0x3   :  { %157 = vmatpush3.msra.mxu0 %v19_v0  ;;  %v15_v5 = vld [vmem:[%s227_s0 + $0x8] sm:$0xff]  ;;  %v147_v6 = vld [vmem:[%s228_s2] ss:$0 sm:$0xff] }
   0x4   :  { %158 = vmatprep.subr.mxu0 %v18_v1 }
   0x5   :  { %159 = vmatpush3.msra.mxu0 %v18_v1 }
   0x6   :  { %160 = vmatprep.subr.mxu0 %v17_v3 }
   0x7   :  { %161 = vmatpush3.msra.mxu0 %v17_v3 }
   0x8   :  { %162 = vmatprep.subr.mxu0 %v16_v4 }
   0x9   :  { %163 = vmatpush3.msra.mxu0 %v16_v4 }
   0xa   :  { %165 = vmatmul.mubr.msk.f32.vlgmr.msra.gmra.mxu0 %vm27_vm0, %v15_v5 }
  0xca   :  { %v166_v7 = vpop.f32.mrf.mxu0 }
  0xcb   :  { %v106_v8 = vadd.f32 %v166_v7, %v147_v6 }
  0xcc   :  { %v100_v9 = vpop.f32.mrf.mxu0 }
  0xcd   :  { %v112_v10 = vand.u32 2147483647, %v106_v8  ;;  %v101_v11 = vadd.f32 %v147_v6, %v100_v9  ;;  %v110_v31 = vmax.f32 %v106_v8, 0.0 }
  0xcf   :  { %v114_v12 = vsub.f32 0.0, %v112_v10  ;;  %v111_v13 = vand.u32 2147483647, %v101_v11  ;;  %v109_v36 = vmax.f32 %v101_v11, 0.0 }
  0xd1   :  { %v117_v14 = vmul.f32 1.442695, %v114_v12  ;;  %v113_v15 = vsub.f32 0.0, %v111_v13 }
  0xd3   :  { %167 = vpow2.f32 %v117_v14  ;;  %v115_v16 = vmul.f32 1.442695, %v113_v15 }
  0xd5   :  { %169 = vpow2.f32 %v115_v16 }
  0xe0   :  { %v168_v17 = vpop.eup %167 }
  0xe1   :  { %v128_v18 = vadd.f32 1.0, %v168_v17  ;;  %v131_v21 = vmul.f32 -0.5, %v168_v17  ;;  %v134_v24 = vand.u32 2147483647, %v168_v17 }
  0xe2   :  { %v170_v19 = vpop.eup %169 }
  0xe3   :  { %171 = vlog2.f32 %v128_v18  ;;  %v119_v20 = vadd.f32 1.0, %v170_v19  ;;  %v122_v22 = vmul.f32 -0.5, %v170_v19  ;;  %v132_v23 = vadd.f32 1.0, %v131_v21 }
  0xe4   :  { %v125_v27 = vand.u32 2147483647, %v170_v19  ;;  %vm135_vm1 = vcmp.lt.f32.partialorder %v134_v24, 0.0004427343 }
  0xe5   :  { %173 = vlog2.f32 %v119_v20  ;;  %v123_v25 = vadd.f32 1.0, %v122_v22  ;;  %v133_v29 = vmul.f32 %v168_v17, %v132_v23 }
  0xe6   :  { %vm126_vm2 = vcmp.lt.f32.partialorder %v125_v27, 0.0004427343 }
  0xe7   :  { %v124_v34 = vmul.f32 %v170_v19, %v123_v25 }
  0xf0   :  { %v172_v26 = vpop.eup %171 }
  0xf1   :  { %v130_v28 = vmul.f32 0.6931472, %v172_v26 }
  0xf2   :  { %v174_v30 = vpop.eup %173 }
  0xf3   :  { %v136_v32 = vsel %vm135_vm1, %v133_v29, %v130_v28  ;;  %v121_v33 = vmul.f32 0.6931472, %v174_v30 }
  0xf4   :  { %v138_v35 = vadd.f32 %v136_v32, %v110_v31 }
  0xf5   :  { %v127_v37 = vsel %vm126_vm2, %v124_v34, %v121_v33 }
  0xf6   :  { %v140_v38 = vadd.f32 1e-06, %v138_v35  ;;  %v137_v39 = vadd.f32 %v127_v37, %v109_v36 }
  0xf8   :  { %142 = vst.msk [vmem:[%s229_s3 + $0x8] sm:$0xff] %vm27_vm0, %v140_v38  ;;  %v139_v40 = vadd.f32 1e-06, %v137_v39 }
  0xfa   :  { %141 = vst.msk [vmem:[%s229_s3] sm:$0xff] %vm27_vm0, %v139_v40 }

</bundles_post_ra>
